<compile_context>
chip_gen: v7x
topology: tpu7x:2x2x1
jax: 0.10.0
libtpu: 0.0.40
codegen_flags: <defaults>
</compile_context>

<pallas_src>
import math
import functools

import jax
import jax.numpy as jnp
from jax import lax
from jax.experimental import pallas as pl
from jax.experimental.pallas import tpu as pltpu


def _layernorm(x, gamma, beta, eps=1e-5):
    mean = jnp.mean(x, axis=-1, keepdims=True)
    c = x - mean
    var = jnp.mean(c * c, axis=-1, keepdims=True)
    return c * lax.rsqrt(var + eps) * gamma + beta


def _gelu(x):
    # GELU as defined in the reference module (tanh approximation)
    return 0.5 * x * (1.0 + jnp.tanh(math.sqrt(2.0 / math.pi) * (x + 0.044715 * x * x * x)))


def transformer_block_kernel(x_ref, mask_ref,
                             wqkv_ref, bqkv_ref, wo_h_ref, bo_ref,
                             w1_ref, b1_ref, w2_ref, b2_ref,
                             ln1_g_ref, ln1_b_ref, ln2_g_ref, ln2_b_ref,
                             o_ref, *, num_heads, d_k, q_tile, num_q_tiles, mm_dtype):
    S = x_ref.shape[1]
    H = num_heads * d_k

    x_full = x_ref[0].astype(jnp.float32)                                 # (S, H)

    # ---------------- input sublayer: LN -> MHA -> residual ----------------
    h1 = _layernorm(x_full, ln1_g_ref[0], ln1_b_ref[0])

    # Fused Q|K|V projection: one MXU pass with N = 3H instead of 3 matmuls.
    qkv = jnp.dot(h1.astype(mm_dtype), wqkv_ref[...],
                  preferred_element_type=jnp.float32) + bqkv_ref[0]       # (S, 3H)

    if num_q_tiles == 1:
        def rows(v):                                                      # static path (demo)
            return v
    else:
        q_start = pl.multiple_of(pl.program_id(1) * q_tile, q_tile)
        def rows(v):
            return lax.dynamic_slice_in_dim(v, q_start, q_tile, axis=0)

    q_all = qkv[:, 0 * H:1 * H]
    k_all = qkv[:, 1 * H:2 * H]
    v_all = qkv[:, 2 * H:3 * H]
    q_rows = rows(q_all)                                                  # (Tq, H)

    def split_heads(t):
        # (rows, H) -> stacked (h, rows, d_k): keeps downstream matmuls as a
        # single batched dot_general instead of h unrolled tiny matmuls.
        return jnp.stack([t[:, hh * d_k:(hh + 1) * d_k] for hh in range(num_heads)],
                         axis=0)

    qh = split_heads(q_rows).astype(mm_dtype)                             # (h, Tq, dk)
    kh = split_heads(k_all).astype(mm_dtype)                              # (h, S,  dk)
    vh = split_heads(v_all).astype(mm_dtype)                              # (h, S,  dk)

    inv_sqrt_dk = jnp.float32(1.0 / math.sqrt(d_k))

    # One stacked (h, Tq, S) score tensor (no per-head live lists).
    scores = jnp.einsum('hqd,hkd->hqk', qh, kh,
                        preferred_element_type=jnp.float32) * inv_sqrt_dk

    masked = (mask_ref[0].astype(jnp.int32) == 0)[None, :, :]             # (1, Tq, S)
    scores = jnp.where(masked, jnp.float32(-1e9), scores)

    # Softmax over the HEAD axis (reference quirk: F.softmax(scores, dim=1)).
    m = jnp.max(scores, axis=0, keepdims=True)
    e = jnp.exp(scores - m)
    denom = jnp.sum(e, axis=0, keepdims=True)
    p = e * pl.reciprocal(denom, approx=True)                             # (h, Tq, S)

    # Batched P @ V; the head-concat is folded into the output projection:
    #   attn_cat @ Wo == sum_h ctx[h] @ Wo[h*dk:(h+1)*dk, :]
    # with Wo pre-reshaped to (h, dk, H) on the host -> no lane-axis concat.
    ctx = jnp.einsum('hqk,hkd->hqd', p.astype(mm_dtype), vh,
                     preferred_element_type=jnp.float32)                  # (h, Tq, dk)
    attn_out = jnp.einsum('hqd,hdo->hqo', ctx.astype(mm_dtype), wo_h_ref[...],
                          preferred_element_type=jnp.float32).sum(axis=0) + bo_ref[0]

    x_tile = rows(x_full)                                                 # (Tq, H)
    # TODO(synk): dropout layers are identity (inference); no RNG dropout here.
    x2 = x_tile + attn_out

    # ---------------- output sublayer: LN -> FFN -> residual ----------------
    h2 = _layernorm(x2, ln2_g_ref[0], ln2_b_ref[0])
    # TODO(synk): at production d_ff, stream w1/w2 over a d_ff grid axis
    # (accumulate ff2 across chunks) instead of whole-resident FFN weights.
    ff1 = _gelu(jnp.dot(h2.astype(mm_dtype), w1_ref[...],
                        preferred_element_type=jnp.float32) + b1_ref[0])
    ff2 = jnp.dot(ff1.astype(mm_dtype), w2_ref[...],
                  preferred_element_type=jnp.float32) + b2_ref[0]

    o_ref[0] = (x2 + ff2).astype(o_ref.dtype)


def transformer_block(x, mask, params, num_heads, *, q_tile=None, matmul_dtype=None):
    B, S, H = x.shape
    assert H % num_heads == 0
    d_k = H // num_heads
    d_ff = params["w1"].shape[1]

    # MXU operand dtype (pass jnp.bfloat16 for production shapes; f32 in the
    # demo so the kernel matches the f32 reference exactly).
    mm_dtype = jnp.dtype(matmul_dtype) if matmul_dtype is not None else jnp.dtype(x.dtype)

    # Query-tile the sequence so the grid is (B, S//Tq): keeps both v7x
    # TensorCores busy at small batch and bounds live scores to (h, Tq, S).
    if q_tile is None:
        q_tile = 128 if (S % 128 == 0) else S
    assert S % q_tile == 0
    num_q = S // q_tile

    # Host-side (one-time) weight packing:
    #   * fused QKV weight (H, 3H) + bias (1, 3H)
    #   * output projection reshaped per head to (h, d_k, H)
    wqkv = jnp.concatenate([params["wq"], params["wk"], params["wv"]], axis=1).astype(mm_dtype)
    bqkv = jnp.concatenate([params["bq"], params["bk"], params["bv"]], axis=1).astype(jnp.float32)
    wo_h = params["wo"].reshape(num_heads, d_k, H).astype(mm_dtype)
    w1 = params["w1"].astype(mm_dtype)
    w2 = params["w2"].astype(mm_dtype)

    # int8 mask: robust integer compare + 4x less HBM->VMEM traffic than f32.
    mask_i8 = (mask != 0).astype(jnp.int8)

    def rep2(shape):
        return pl.BlockSpec(shape, lambda b, qi: (0, 0))

    def rep3(shape):
        return pl.BlockSpec(shape, lambda b, qi: (0, 0, 0))

    # NOTE: H=32 / d_k=8 in the demo are lane-sparse; at production sizes pad
    # H and d_ff to multiples of 128 for lane-dense stores.
    in_specs = [
        pl.BlockSpec((1, S, H), lambda b, qi: (b, 0, 0)),        # x (full seq: K/V need all rows)
        pl.BlockSpec((1, q_tile, S), lambda b, qi: (b, qi, 0)),  # mask (query tile)
        rep2((H, 3 * H)), rep2((1, 3 * H)),                      # wqkv, bqkv
        rep3((num_heads, d_k, H)), rep2((1, H)),                 # wo_h, bo
        rep2((H, d_ff)), rep2((1, d_ff)),                        # w1, b1
        rep2((d_ff, H)), rep2((1, H)),                           # w2, b2
        rep2((1, H)), rep2((1, H)),                              # ln1 gamma/beta
        rep2((1, H)), rep2((1, H)),                              # ln2 gamma/beta
    ]

    # Rough VMEM budget (double-buffered weights + live activations), clamped
    # to a value safe on every generation (v7x has only 64 MiB per core).
    wbytes = mm_dtype.itemsize * (H * 3 * H + H * H + 2 * H * d_ff)
    abytes = 4 * (2 * S * H + S * 3 * H + 4 * num_heads * q_tile * S
                  + num_heads * q_tile * (d_k + H) + 2 * q_tile * d_ff + 6 * q_tile * H)
    vmem_limit = int(min(max(2 * wbytes + abytes + (2 << 20), 16 << 20), 48 << 20))

    kernel = functools.partial(transformer_block_kernel,
                               num_heads=num_heads, d_k=d_k,
                               q_tile=q_tile, num_q_tiles=num_q,
                               mm_dtype=mm_dtype)

    return pl.pallas_call(
        kernel,
        out_shape=jax.ShapeDtypeStruct((B, S, H), x.dtype),
        grid_spec=pltpu.PrefetchScalarGridSpec(
            num_scalar_prefetch=0,
            grid=(B, num_q),
            in_specs=in_specs,
            out_specs=pl.BlockSpec((1, q_tile, H), lambda b, qi: (b, qi, 0)),
        ),
        compiler_params=pltpu.CompilerParams(
            dimension_semantics=("parallel", "parallel"),
            vmem_limit_bytes=vmem_limit),
    )(x, mask_i8, wqkv, bqkv, wo_h, params["bo"],
      w1, params["b1"], w2, params["b2"],
      params["ln1_g"], params["ln1_b"], params["ln2_g"], params["ln2_b"])


if __name__ == "__main__":
    # Small shapes consistent with the module: TransformerBlock(hidden=32,
    # attn_heads=4, feed_forward_hidden=64), batch=2, seq=8.
    B, S, H, HEADS, D_FF = 2, 8, 32, 4, 64

    key = jax.random.PRNGKey(0)
    ks = jax.random.split(key, 16)

    def init(k, shape, scale=0.02):
        return (scale * jax.random.normal(k, shape)).astype(jnp.float32)

    params = {
        "wq": init(ks[0], (H, H)),  "bq": init(ks[1], (1, H)),
        "wk": init(ks[2], (H, H)),  "bk": init(ks[3], (1, H)),
        "wv": init(ks[4], (H, H)),  "bv": init(ks[5], (1, H)),
        "wo": init(ks[6], (H, H)),  "bo": init(ks[7], (1, H)),
        "w1": init(ks[8], (H, D_FF)),  "b1": init(ks[9], (1, D_FF)),
        "w2": init(ks[10], (D_FF, H)), "b2": init(ks[11], (1, H)),
        "ln1_g": jnp.ones((1, H), jnp.float32),
        "ln1_b": jnp.zeros((1, H), jnp.float32),
        "ln2_g": jnp.ones((1, H), jnp.float32),
        "ln2_b": jnp.zeros((1, H), jnp.float32),
    }

    x = jax.random.normal(ks[12], (B, S, H), jnp.float32)
    # Lower-triangular (causal-like) attention mask, shared across heads.
    mask = jnp.broadcast_to(jnp.tril(jnp.ones((S, S), jnp.float32)), (B, S, S))

    out = transformer_block(x, mask, params, HEADS)
    jax.block_until_ready(out)
    assert out.shape == (B, S, H)
    print("KERNEL_OK")
</pallas_src>

<mosaic_0001>
module attributes {stable_mosaic.version = 11 : i64} {
  func.func @transformer_block_kernel(%arg0: i32, %arg1: i32, %arg2: memref<1x8x32xf32, #tpu.memory_space<vmem>>, %arg3: memref<1x8x8xi8, #tpu.memory_space<vmem>>, %arg4: memref<32x96xf32, #tpu.memory_space<vmem>>, %arg5: memref<1x96xf32, #tpu.memory_space<vmem>>, %arg6: memref<4x8x32xf32, #tpu.memory_space<vmem>>, %arg7: memref<1x32xf32, #tpu.memory_space<vmem>>, %arg8: memref<32x64xf32, #tpu.memory_space<vmem>>, %arg9: memref<1x64xf32, #tpu.memory_space<vmem>>, %arg10: memref<64x32xf32, #tpu.memory_space<vmem>>, %arg11: memref<1x32xf32, #tpu.memory_space<vmem>>, %arg12: memref<1x32xf32, #tpu.memory_space<vmem>>, %arg13: memref<1x32xf32, #tpu.memory_space<vmem>>, %arg14: memref<1x32xf32, #tpu.memory_space<vmem>>, %arg15: memref<1x32xf32, #tpu.memory_space<vmem>>, %arg16: memref<1x8x32xf32, #tpu.memory_space<vmem>>) attributes {dimension_semantics = [#tpu.dimension_semantics<parallel>, #tpu.dimension_semantics<parallel>], iteration_bounds = array<i64: 2, 1>, scalar_prefetch = 0 : i64, scratch_operands = 0 : i64, tpu.core_type = #tpu.core_type<tc>, window_params = [{transform_indices = @transform_0, window_bounds = array<i64: 1, 8, 32>}, {transform_indices = @transform_1, window_bounds = array<i64: 1, 8, 8>}, {pipeline_mode = #tpu.pipeline_mode<synchronous>, transform_indices = @transform_2, window_bounds = array<i64: 32, 96>}, {pipeline_mode = #tpu.pipeline_mode<synchronous>, transform_indices = @transform_3, window_bounds = array<i64: 1, 96>}, {pipeline_mode = #tpu.pipeline_mode<synchronous>, transform_indices = @transform_4, window_bounds = array<i64: 4, 8, 32>}, {pipeline_mode = #tpu.pipeline_mode<synchronous>, transform_indices = @transform_5, window_bounds = array<i64: 1, 32>}, {pipeline_mode = #tpu.pipeline_mode<synchronous>, transform_indices = @transform_6, window_bounds = array<i64: 32, 64>}, {pipeline_mode = #tpu.pipeline_mode<synchronous>, transform_indices = @transform_7, window_bounds = array<i64: 1, 64>}, {pipeline_mode = #tpu.pipeline_mode<synchronous>, transform_indices = @transform_8, window_bounds = array<i64: 64, 32>}, {pipeline_mode = #tpu.pipeline_mode<synchronous>, transform_indices = @transform_9, window_bounds = array<i64: 1, 32>}, {pipeline_mode = #tpu.pipeline_mode<synchronous>, transform_indices = @transform_10, window_bounds = array<i64: 1, 32>}, {pipeline_mode = #tpu.pipeline_mode<synchronous>, transform_indices = @transform_11, window_bounds = array<i64: 1, 32>}, {pipeline_mode = #tpu.pipeline_mode<synchronous>, transform_indices = @transform_12, window_bounds = array<i64: 1, 32>}, {pipeline_mode = #tpu.pipeline_mode<synchronous>, transform_indices = @transform_13, window_bounds = array<i64: 1, 32>}, {transform_indices = @transform_14, window_bounds = array<i64: 1, 8, 32>}]} {
    %c0 = arith.constant 0 : index
    %c0_0 = arith.constant 0 : index
    %c0_1 = arith.constant 0 : index
    %0 = vector.load %arg2[%c0, %c0_0, %c0_1] : memref<1x8x32xf32, #tpu.memory_space<vmem>>, vector<1x8x32xf32>
    %1 = vector.shape_cast %0 : vector<1x8x32xf32> to vector<8x32xf32>
    %c0_2 = arith.constant 0 : index
    %c0_3 = arith.constant 0 : index
    %2 = vector.load %arg12[%c0_2, %c0_3] : memref<1x32xf32, #tpu.memory_space<vmem>>, vector<1x32xf32>
    %3 = vector.shape_cast %2 : vector<1x32xf32> to vector<32xf32>
    %c0_4 = arith.constant 0 : index
    %c0_5 = arith.constant 0 : index
    %4 = vector.load %arg13[%c0_4, %c0_5] : memref<1x32xf32, #tpu.memory_space<vmem>>, vector<1x32xf32>
    %5 = vector.shape_cast %4 : vector<1x32xf32> to vector<32xf32>
    %cst = arith.constant dense<0.000000e+00> : vector<8xf32>
    %6 = vector.multi_reduction <add>, %1, %cst [1] : vector<8x32xf32> to vector<8xf32>
    %7 = vector.shape_cast %6 : vector<8xf32> to vector<8x1xf32>
    %cst_6 = arith.constant 3.200000e+01 : f32
    %8 = vector.broadcast %cst_6 : f32 to vector<8x1xf32>
    %9 = arith.divf %7, %8 : vector<8x1xf32>
    %10 = vector.broadcast %9 : vector<8x1xf32> to vector<8x32xf32>
    %11 = arith.subf %1, %10 : vector<8x32xf32>
    %12 = arith.mulf %11, %11 : vector<8x32xf32>
    %cst_7 = arith.constant dense<0.000000e+00> : vector<8xf32>
    %13 = vector.multi_reduction <add>, %12, %cst_7 [1] : vector<8x32xf32> to vector<8xf32>
    %14 = vector.shape_cast %13 : vector<8xf32> to vector<8x1xf32>
    %cst_8 = arith.constant 3.200000e+01 : f32
    %15 = vector.broadcast %cst_8 : f32 to vector<8x1xf32>
    %16 = arith.divf %14, %15 : vector<8x1xf32>
    %cst_9 = arith.constant 9.99999974E-6 : f32
    %17 = vector.broadcast %cst_9 : f32 to vector<8x1xf32>
    %18 = arith.addf %16, %17 : vector<8x1xf32>
    %19 = math.rsqrt %18 : vector<8x1xf32>
    %20 = vector.broadcast %19 : vector<8x1xf32> to vector<8x32xf32>
    %21 = arith.mulf %11, %20 : vector<8x32xf32>
    %22 = vector.shape_cast %3 : vector<32xf32> to vector<1x32xf32>
    %23 = vector.broadcast %22 : vector<1x32xf32> to vector<8x32xf32>
    %24 = arith.mulf %21, %23 : vector<8x32xf32>
    %25 = vector.shape_cast %5 : vector<32xf32> to vector<1x32xf32>
    %26 = vector.broadcast %25 : vector<1x32xf32> to vector<8x32xf32>
    %27 = arith.addf %24, %26 : vector<8x32xf32>
    %c0_10 = arith.constant 0 : index
    %c0_11 = arith.constant 0 : index
    %28 = vector.load %arg4[%c0_10, %c0_11] : memref<32x96xf32, #tpu.memory_space<vmem>>, vector<32x96xf32>
    %cst_12 = arith.constant dense<0.000000e+00> : vector<8x96xf32>
    %29 = tpu.matmul %27, %28, %cst_12 {dimension_numbers = #tpu.dot_dimension_numbers<[1], [0], [0], [1], [0, 0, 1, 1], [], []>} : vector<8x32xf32>, vector<32x96xf32>, vector<8x96xf32> -> vector<8x96xf32>
    %c0_13 = arith.constant 0 : index
    %c0_14 = arith.constant 0 : index
    %30 = vector.load %arg5[%c0_13, %c0_14] : memref<1x96xf32, #tpu.memory_space<vmem>>, vector<1x96xf32>
    %31 = vector.shape_cast %30 : vector<1x96xf32> to vector<96xf32>
    %32 = vector.shape_cast %31 : vector<96xf32> to vector<1x96xf32>
    %33 = vector.broadcast %32 : vector<1x96xf32> to vector<8x96xf32>
    %34 = arith.addf %29, %33 : vector<8x96xf32>
    %35 = vector.extract_strided_slice %34 {offsets = [0, 0], sizes = [8, 32], strides = [1, 1]} : vector<8x96xf32> to vector<8x32xf32>
    %36 = vector.extract_strided_slice %34 {offsets = [0, 32], sizes = [8, 32], strides = [1, 1]} : vector<8x96xf32> to vector<8x32xf32>
    %37 = vector.extract_strided_slice %34 {offsets = [0, 64], sizes = [8, 32], strides = [1, 1]} : vector<8x96xf32> to vector<8x32xf32>
    %38 = vector.extract_strided_slice %35 {offsets = [0, 0], sizes = [8, 8], strides = [1, 1]} : vector<8x32xf32> to vector<8x8xf32>
    %39 = vector.extract_strided_slice %35 {offsets = [0, 8], sizes = [8, 8], strides = [1, 1]} : vector<8x32xf32> to vector<8x8xf32>
    %40 = vector.extract_strided_slice %35 {offsets = [0, 16], sizes = [8, 8], strides = [1, 1]} : vector<8x32xf32> to vector<8x8xf32>
    %41 = vector.extract_strided_slice %35 {offsets = [0, 24], sizes = [8, 8], strides = [1, 1]} : vector<8x32xf32> to vector<8x8xf32>
    %42 = vector.shape_cast %38 : vector<8x8xf32> to vector<1x8x8xf32>
    %43 = vector.shape_cast %39 : vector<8x8xf32> to vector<1x8x8xf32>
    %44 = vector.shape_cast %40 : vector<8x8xf32> to vector<1x8x8xf32>
    %45 = vector.shape_cast %41 : vector<8x8xf32> to vector<1x8x8xf32>
    %46 = tpu.concatenate %42, %43, %44, %45 in 0 : vector<1x8x8xf32>, vector<1x8x8xf32>, vector<1x8x8xf32>, vector<1x8x8xf32> -> vector<4x8x8xf32>
    %47 = vector.extract_strided_slice %36 {offsets = [0, 0], sizes = [8, 8], strides = [1, 1]} : vector<8x32xf32> to vector<8x8xf32>
    %48 = vector.extract_strided_slice %36 {offsets = [0, 8], sizes = [8, 8], strides = [1, 1]} : vector<8x32xf32> to vector<8x8xf32>
    %49 = vector.extract_strided_slice %36 {offsets = [0, 16], sizes = [8, 8], strides = [1, 1]} : vector<8x32xf32> to vector<8x8xf32>
    %50 = vector.extract_strided_slice %36 {offsets = [0, 24], sizes = [8, 8], strides = [1, 1]} : vector<8x32xf32> to vector<8x8xf32>
    %51 = vector.shape_cast %47 : vector<8x8xf32> to vector<1x8x8xf32>
    %52 = vector.shape_cast %48 : vector<8x8xf32> to vector<1x8x8xf32>
    %53 = vector.shape_cast %49 : vector<8x8xf32> to vector<1x8x8xf32>
    %54 = vector.shape_cast %50 : vector<8x8xf32> to vector<1x8x8xf32>
    %55 = tpu.concatenate %51, %52, %53, %54 in 0 : vector<1x8x8xf32>, vector<1x8x8xf32>, vector<1x8x8xf32>, vector<1x8x8xf32> -> vector<4x8x8xf32>
    %56 = vector.extract_strided_slice %37 {offsets = [0, 0], sizes = [8, 8], strides = [1, 1]} : vector<8x32xf32> to vector<8x8xf32>
    %57 = vector.extract_strided_slice %37 {offsets = [0, 8], sizes = [8, 8], strides = [1, 1]} : vector<8x32xf32> to vector<8x8xf32>
    %58 = vector.extract_strided_slice %37 {offsets = [0, 16], sizes = [8, 8], strides = [1, 1]} : vector<8x32xf32> to vector<8x8xf32>
    %59 = vector.extract_strided_slice %37 {offsets = [0, 24], sizes = [8, 8], strides = [1, 1]} : vector<8x32xf32> to vector<8x8xf32>
    %60 = vector.shape_cast %56 : vector<8x8xf32> to vector<1x8x8xf32>
    %61 = vector.shape_cast %57 : vector<8x8xf32> to vector<1x8x8xf32>
    %62 = vector.shape_cast %58 : vector<8x8xf32> to vector<1x8x8xf32>
    %63 = vector.shape_cast %59 : vector<8x8xf32> to vector<1x8x8xf32>
    %64 = tpu.concatenate %60, %61, %62, %63 in 0 : vector<1x8x8xf32>, vector<1x8x8xf32>, vector<1x8x8xf32>, vector<1x8x8xf32> -> vector<4x8x8xf32>
    "tpu.trace_start"() <{level = 10 : i32, message = "hqd,hkd->hqk"}> : () -> ()
    %cst_15 = arith.constant dense<0.000000e+00> : vector<4x8x8xf32>
    %65 = tpu.matmul %46, %55, %cst_15 {dimension_numbers = #tpu.dot_dimension_numbers<[2], [2], [1], [1], [0, 0, 0, 1, 1, 1], [0], [0]>} : vector<4x8x8xf32>, vector<4x8x8xf32>, vector<4x8x8xf32> -> vector<4x8x8xf32>
    "tpu.trace_stop"() : () -> ()
    %cst_16 = arith.constant 0.353553385 : f32
    %66 = vector.broadcast %cst_16 : f32 to vector<4x8x8xf32>
    %67 = arith.mulf %65, %66 : vector<4x8x8xf32>
    %c0_17 = arith.constant 0 : index
    %c0_18 = arith.constant 0 : index
    %c0_19 = arith.constant 0 : index
    %68 = vector.load %arg3[%c0_17, %c0_18, %c0_19] : memref<1x8x8xi8, #tpu.memory_space<vmem>>, vector<1x8x8xi8>
    %69 = vector.shape_cast %68 : vector<1x8x8xi8> to vector<8x8xi8>
    %70 = arith.extsi %69 : vector<8x8xi8> to vector<8x8xi32>
    %c0_i32 = arith.constant 0 : i32
    %71 = vector.broadcast %c0_i32 : i32 to vector<8x8xi32>
    %72 = arith.cmpi eq, %70, %71 : vector<8x8xi32>
    %73 = vector.shape_cast %72 : vector<8x8xi1> to vector<1x8x8xi1>
    %cst_20 = arith.constant -1.000000e+09 : f32
    %74 = vector.shape_cast %73 : vector<1x8x8xi1> to vector<1x8x8xi1>
    %75 = vector.broadcast %74 : vector<1x8x8xi1> to vector<4x8x8xi1>
    %76 = vector.broadcast %cst_20 : f32 to vector<4x8x8xf32>
    %77 = arith.select %75, %76, %67 : vector<4x8x8xi1>, vector<4x8x8xf32>
    %cst_21 = arith.constant dense<0xFF800000> : vector<8x8xf32>
    %78 = vector.multi_reduction <maximumf>, %77, %cst_21 [0] : vector<4x8x8xf32> to vector<8x8xf32>
    %79 = vector.shape_cast %78 : vector<8x8xf32> to vector<1x8x8xf32>
    %80 = vector.broadcast %79 : vector<1x8x8xf32> to vector<4x8x8xf32>
    %81 = arith.subf %77, %80 : vector<4x8x8xf32>
    %82 = math.exp %81 : vector<4x8x8xf32>
    %cst_22 = arith.constant dense<0.000000e+00> : vector<8x8xf32>
    %83 = vector.multi_reduction <add>, %82, %cst_22 [0] : vector<4x8x8xf32> to vector<8x8xf32>
    %84 = vector.shape_cast %83 : vector<8x8xf32> to vector<1x8x8xf32>
    %85 = tpu.reciprocal %84 {approx = true} : vector<1x8x8xf32> -> vector<1x8x8xf32>
    %86 = vector.broadcast %85 : vector<1x8x8xf32> to vector<4x8x8xf32>
    %87 = arith.mulf %82, %86 : vector<4x8x8xf32>
    "tpu.trace_start"() <{level = 10 : i32, message = "hqk,hkd->hqd"}> : () -> ()
    %cst_23 = arith.constant dense<0.000000e+00> : vector<4x8x8xf32>
    %88 = tpu.matmul %87, %64, %cst_23 {dimension_numbers = #tpu.dot_dimension_numbers<[2], [1], [1], [2], [0, 0, 0, 1, 1, 2], [0], [0]>} : vector<4x8x8xf32>, vector<4x8x8xf32>, vector<4x8x8xf32> -> vector<4x8x8xf32>
    "tpu.trace_stop"() : () -> ()
    %c0_24 = arith.constant 0 : index
    %c0_25 = arith.constant 0 : index
    %c0_26 = arith.constant 0 : index
    %89 = vector.load %arg6[%c0_24, %c0_25, %c0_26] : memref<4x8x32xf32, #tpu.memory_space<vmem>>, vector<4x8x32xf32>
    "tpu.trace_start"() <{level = 10 : i32, message = "hqd,hdo->hqo"}> : () -> ()
    %cst_27 = arith.constant dense<0.000000e+00> : vector<4x8x32xf32>
    %90 = tpu.matmul %88, %89, %cst_27 {dimension_numbers = #tpu.dot_dimension_numbers<[2], [1], [1], [2], [0, 0, 0, 1, 1, 2], [0], [0]>} : vector<4x8x8xf32>, vector<4x8x32xf32>, vector<4x8x32xf32> -> vector<4x8x32xf32>
    "tpu.trace_stop"() : () -> ()
    %cst_28 = arith.constant dense<0.000000e+00> : vector<8x32xf32>
    %91 = vector.multi_reduction <add>, %90, %cst_28 [0] : vector<4x8x32xf32> to vector<8x32xf32>
    %c0_29 = arith.constant 0 : index
    %c0_30 = arith.constant 0 : index
    %92 = vector.load %arg7[%c0_29, %c0_30] : memref<1x32xf32, #tpu.memory_space<vmem>>, vector<1x32xf32>
    %93 = vector.shape_cast %92 : vector<1x32xf32> to vector<32xf32>
    %94 = vector.shape_cast %93 : vector<32xf32> to vector<1x32xf32>
    %95 = vector.broadcast %94 : vector<1x32xf32> to vector<8x32xf32>
    %96 = arith.addf %91, %95 : vector<8x32xf32>
    %97 = arith.addf %1, %96 : vector<8x32xf32>
    %c0_31 = arith.constant 0 : index
    %c0_32 = arith.constant 0 : index
    %98 = vector.load %arg14[%c0_31, %c0_32] : memref<1x32xf32, #tpu.memory_space<vmem>>, vector<1x32xf32>
    %99 = vector.shape_cast %98 : vector<1x32xf32> to vector<32xf32>
    %c0_33 = arith.constant 0 : index
    %c0_34 = arith.constant 0 : index
    %100 = vector.load %arg15[%c0_33, %c0_34] : memref<1x32xf32, #tpu.memory_space<vmem>>, vector<1x32xf32>
    %101 = vector.shape_cast %100 : vector<1x32xf32> to vector<32xf32>
    %cst_35 = arith.constant dense<0.000000e+00> : vector<8xf32>
    %102 = vector.multi_reduction <add>, %97, %cst_35 [1] : vector<8x32xf32> to vector<8xf32>
    %103 = vector.shape_cast %102 : vector<8xf32> to vector<8x1xf32>
    %cst_36 = arith.constant 3.200000e+01 : f32
    %104 = vector.broadcast %cst_36 : f32 to vector<8x1xf32>
    %105 = arith.divf %103, %104 : vector<8x1xf32>
    %106 = vector.broadcast %105 : vector<8x1xf32> to vector<8x32xf32>
    %107 = arith.subf %97, %106 : vector<8x32xf32>
    %108 = arith.mulf %107, %107 : vector<8x32xf32>
    %cst_37 = arith.constant dense<0.000000e+00> : vector<8xf32>
    %109 = vector.multi_reduction <add>, %108, %cst_37 [1] : vector<8x32xf32> to vector<8xf32>
    %110 = vector.shape_cast %109 : vector<8xf32> to vector<8x1xf32>
    %cst_38 = arith.constant 3.200000e+01 : f32
    %111 = vector.broadcast %cst_38 : f32 to vector<8x1xf32>
    %112 = arith.divf %110, %111 : vector<8x1xf32>
    %cst_39 = arith.constant 9.99999974E-6 : f32
    %113 = vector.broadcast %cst_39 : f32 to vector<8x1xf32>
    %114 = arith.addf %112, %113 : vector<8x1xf32>
    %115 = math.rsqrt %114 : vector<8x1xf32>
    %116 = vector.broadcast %115 : vector<8x1xf32> to vector<8x32xf32>
    %117 = arith.mulf %107, %116 : vector<8x32xf32>
    %118 = vector.shape_cast %99 : vector<32xf32> to vector<1x32xf32>
    %119 = vector.broadcast %118 : vector<1x32xf32> to vector<8x32xf32>
    %120 = arith.mulf %117, %119 : vector<8x32xf32>
    %121 = vector.shape_cast %101 : vector<32xf32> to vector<1x32xf32>
    %122 = vector.broadcast %121 : vector<1x32xf32> to vector<8x32xf32>
    %123 = arith.addf %120, %122 : vector<8x32xf32>
    %c0_40 = arith.constant 0 : index
    %c0_41 = arith.constant 0 : index
    %124 = vector.load %arg8[%c0_40, %c0_41] : memref<32x64xf32, #tpu.memory_space<vmem>>, vector<32x64xf32>
    %cst_42 = arith.constant dense<0.000000e+00> : vector<8x64xf32>
    %125 = tpu.matmul %123, %124, %cst_42 {dimension_numbers = #tpu.dot_dimension_numbers<[1], [0], [0], [1], [0, 0, 1, 1], [], []>} : vector<8x32xf32>, vector<32x64xf32>, vector<8x64xf32> -> vector<8x64xf32>
    %c0_43 = arith.constant 0 : index
    %c0_44 = arith.constant 0 : index
    %126 = vector.load %arg9[%c0_43, %c0_44] : memref<1x64xf32, #tpu.memory_space<vmem>>, vector<1x64xf32>
    %127 = vector.shape_cast %126 : vector<1x64xf32> to vector<64xf32>
    %128 = vector.shape_cast %127 : vector<64xf32> to vector<1x64xf32>
    %129 = vector.broadcast %128 : vector<1x64xf32> to vector<8x64xf32>
    %130 = arith.addf %125, %129 : vector<8x64xf32>
    %cst_45 = arith.constant 5.000000e-01 : f32
    %131 = vector.broadcast %cst_45 : f32 to vector<8x64xf32>
    %132 = arith.mulf %131, %130 : vector<8x64xf32>
    %cst_46 = arith.constant 4.471500e-02 : f32
    %133 = vector.broadcast %cst_46 : f32 to vector<8x64xf32>
    %134 = arith.mulf %133, %130 : vector<8x64xf32>
    %135 = arith.mulf %134, %130 : vector<8x64xf32>
    %136 = arith.mulf %135, %130 : vector<8x64xf32>
    %137 = arith.addf %130, %136 : vector<8x64xf32>
    %cst_47 = arith.constant 0.797884583 : f32
    %138 = vector.broadcast %cst_47 : f32 to vector<8x64xf32>
    %139 = arith.mulf %138, %137 : vector<8x64xf32>
    %140 = math.tanh %139 : vector<8x64xf32>
    %cst_48 = arith.constant 1.000000e+00 : f32
    %141 = vector.broadcast %cst_48 : f32 to vector<8x64xf32>
    %142 = arith.addf %141, %140 : vector<8x64xf32>
    %143 = arith.mulf %132, %142 : vector<8x64xf32>
    %c0_49 = arith.constant 0 : index
    %c0_50 = arith.constant 0 : index
    %144 = vector.load %arg10[%c0_49, %c0_50] : memref<64x32xf32, #tpu.memory_space<vmem>>, vector<64x32xf32>
    %cst_51 = arith.constant dense<0.000000e+00> : vector<8x32xf32>
    %145 = tpu.matmul %143, %144, %cst_51 {dimension_numbers = #tpu.dot_dimension_numbers<[1], [0], [0], [1], [0, 0, 1, 1], [], []>} : vector<8x64xf32>, vector<64x32xf32>, vector<8x32xf32> -> vector<8x32xf32>
    %c0_52 = arith.constant 0 : index
    %c0_53 = arith.constant 0 : index
    %146 = vector.load %arg11[%c0_52, %c0_53] : memref<1x32xf32, #tpu.memory_space<vmem>>, vector<1x32xf32>
    %147 = vector.shape_cast %146 : vector<1x32xf32> to vector<32xf32>
    %148 = vector.shape_cast %147 : vector<32xf32> to vector<1x32xf32>
    %149 = vector.broadcast %148 : vector<1x32xf32> to vector<8x32xf32>
    %150 = arith.addf %145, %149 : vector<8x32xf32>
    %151 = arith.addf %97, %150 : vector<8x32xf32>
    %c0_54 = arith.constant 0 : index
    %c0_55 = arith.constant 0 : index
    %c0_56 = arith.constant 0 : index
    %152 = vector.load %arg16[%c0_54, %c0_55, %c0_56] : memref<1x8x32xf32, #tpu.memory_space<vmem>>, vector<1x8x32xf32>
    %153 = vector.shape_cast %152 : vector<1x8x32xf32> to vector<8x32xf32>
    %154 = vector.shape_cast %151 : vector<8x32xf32> to vector<1x8x32xf32>
    tpu.vector_store %arg16[%c0_54, %c0_55, %c0_56], %154 {strides = array<i32>} : memref<1x8x32xf32, #tpu.memory_space<vmem>>, vector<1x8x32xf32>,
    return
  }
  func.func @transform_0(%arg0: i32, %arg1: i32) -> (i32, i32, i32) {
    %c0_i32 = arith.constant 0 : i32
    %c0_i32_0 = arith.constant 0 : i32
    %c0_i32_1 = arith.constant 0 : i32
    return %arg0, %c0_i32, %c0_i32_0 : i32, i32, i32
  }
  func.func @transform_1(%arg0: i32, %arg1: i32) -> (i32, i32, i32) {
    %c0_i32 = arith.constant 0 : i32
    %c0_i32_0 = arith.constant 0 : i32
    return %arg0, %arg1, %c0_i32 : i32, i32, i32
  }
  func.func @transform_2(%arg0: i32, %arg1: i32) -> (i32, i32) {
    %c0_i32 = arith.constant 0 : i32
    %c0_i32_0 = arith.constant 0 : i32
    %c0_i32_1 = arith.constant 0 : i32
    return %c0_i32, %c0_i32_0 : i32, i32
  }
  func.func @transform_3(%arg0: i32, %arg1: i32) -> (i32, i32) {
    %c0_i32 = arith.constant 0 : i32
    %c0_i32_0 = arith.constant 0 : i32
    %c0_i32_1 = arith.constant 0 : i32
    return %c0_i32, %c0_i32_0 : i32, i32
  }
  func.func @transform_4(%arg0: i32, %arg1: i32) -> (i32, i32, i32) {
    %c0_i32 = arith.constant 0 : i32
    %c0_i32_0 = arith.constant 0 : i32
    %c0_i32_1 = arith.constant 0 : i32
    %c0_i32_2 = arith.constant 0 : i32
    return %c0_i32, %c0_i32_0, %c0_i32_1 : i32, i32, i32
  }
  func.func @transform_5(%arg0: i32, %arg1: i32) -> (i32, i32) {
    %c0_i32 = arith.constant 0 : i32
    %c0_i32_0 = arith.constant 0 : i32
    %c0_i32_1 = arith.constant 0 : i32
    return %c0_i32, %c0_i32_0 : i32, i32
  }
  func.func @transform_6(%arg0: i32, %arg1: i32) -> (i32, i32) {
    %c0_i32 = arith.constant 0 : i32
    %c0_i32_0 = arith.constant 0 : i32
    %c0_i32_1 = arith.constant 0 : i32
    return %c0_i32, %c0_i32_0 : i32, i32
  }
  func.func @transform_7(%arg0: i32, %arg1: i32) -> (i32, i32) {
    %c0_i32 = arith.constant 0 : i32
    %c0_i32_0 = arith.constant 0 : i32
    %c0_i32_1 = arith.constant 0 : i32
    return %c0_i32, %c0_i32_0 : i32, i32
  }
  func.func @transform_8(%arg0: i32, %arg1: i32) -> (i32, i32) {
    %c0_i32 = arith.constant 0 : i32
    %c0_i32_0 = arith.constant 0 : i32
    %c0_i32_1 = arith.constant 0 : i32
    return %c0_i32, %c0_i32_0 : i32, i32
  }
  func.func @transform_9(%arg0: i32, %arg1: i32) -> (i32, i32) {
    %c0_i32 = arith.constant 0 : i32
    %c0_i32_0 = arith.constant 0 : i32
    %c0_i32_1 = arith.constant 0 : i32
    return %c0_i32, %c0_i32_0 : i32, i32
  }
  func.func @transform_10(%arg0: i32, %arg1: i32) -> (i32, i32) {
    %c0_i32 = arith.constant 0 : i32
    %c0_i32_0 = arith.constant 0 : i32
    %c0_i32_1 = arith.constant 0 : i32
    return %c0_i32, %c0_i32_0 : i32, i32
  }
  func.func @transform_11(%arg0: i32, %arg1: i32) -> (i32, i32) {
    %c0_i32 = arith.constant 0 : i32
    %c0_i32_0 = arith.constant 0 : i32
    %c0_i32_1 = arith.constant 0 : i32
    return %c0_i32, %c0_i32_0 : i32, i32
  }
  func.func @transform_12(%arg0: i32, %arg1: i32) -> (i32, i32) {
    %c0_i32 = arith.constant 0 : i32
    %c0_i32_0 = arith.constant 0 : i32
    %c0_i32_1 = arith.constant 0 : i32
    return %c0_i32, %c0_i32_0 : i32, i32
  }
  func.func @transform_13(%arg0: i32, %arg1: i32) -> (i32, i32) {
    %c0_i32 = arith.constant 0 : i32
    %c0_i32_0 = arith.constant 0 : i32
    %c0_i32_1 = arith.constant 0 : i32
    return %c0_i32, %c0_i32_0 : i32, i32
  }
  func.func @transform_14(%arg0: i32, %arg1: i32) -> (i32, i32, i32) {
    %c0_i32 = arith.constant 0 : i32
    %c0_i32_0 = arith.constant 0 : i32
    return %arg0, %arg1, %c0_i32 : i32, i32, i32
  }
}

</mosaic_0001>

<bundles_post_ra>
// kernel: tpu_custom_call.1
= control target key start
LH: loop header
LB: loop body
LE: loop exit
PB: predicated region body
PF: predicated region fallthrough
CT: control target
= control target key end

     0   :  { %s2905_s0 = inlined_call_operand.hbm [shape: f32[2,8,32], index: 0, kind: input, shape index: {}]   ;;  %s2906_s1 = inlined_call_operand.hbm [shape: s8[2,8,8], index: 1, kind: input, shape index: {}]   ;;  %s2907_s2 = inlined_call_operand.vmem [shape: f32[32,96], index: 2, kind: input, shape index: {}]   ;;  %s2908_s3 = inlined_call_operand.vmem [shape: f32[1,96], index: 3, kind: input, shape index: {}]   ;;  %s2909_s4 = inlined_call_operand.vmem [shape: f32[4,8,32], index: 4, kind: input, shape index: {}]   ;;  %s2910_s5 = inlined_call_operand.vmem [shape: f32[1,32], index: 5, kind: input, shape index: {}]   ;;  %s2911_s6 = inlined_call_operand.vmem [shape: f32[32,64], index: 6, kind: input, shape index: {}]   ;;  %s2912_s7 = inlined_call_operand.vmem [shape: f32[1,64], index: 7, kind: input, shape index: {}]   ;;  %s2913_s8 = inlined_call_operand.vmem [shape: f32[64,32], index: 8, kind: input, shape index: {}]   ;;  %s2914_s9 = inlined_call_operand.vmem [shape: f32[1,32], index: 9, kind: input, shape index: {}]   ;;  %s2915_s10 = inlined_call_operand.vmem [shape: f32[1,32], index: 10, kind: input, shape index: {}]   ;;  %s2916_s11 = inlined_call_operand.vmem [shape: f32[1,32], index: 11, kind: input, shape index: {}]   ;;  %s2917_s12 = inlined_call_operand.vmem [shape: f32[1,32], index: 12, kind: input, shape index: {}]   ;;  %s2918_s13 = inlined_call_operand.vmem [shape: f32[1,32], index: 13, kind: input, shape index: {}]   ;;  %s2919_s14 = inlined_call_operand.hbm [shape: f32[2,8,32], index: 14, kind: output, shape index: {}]  }
   0x1   :  { %2928 = sst [smem:[#allocation17_spill]] %s2905_s0 }
   0x2   :  { %2929 = sst [smem:[#allocation18_spill]] %s2914_s9 }
   0x3   :  { %2930 = sst [smem:[#allocation19_spill]] %s2919_s14 }
   0x4   :  { %19 = vsyncpa [#allocation3], 0 }
   0x5   :  { %21 = vsyncpa [#allocation3 + $0x1], 0 }
   0x6   :  { %22 = vsyncpa [#allocation6], 0 }
   0x7   :  { %24 = vsyncpa [#allocation6 + $0x1], 0 }
   0x8   :  { %25 = vsyncpa [#allocation4], 0 }
   0x9   :  { %27 = vsyncpa [#allocation4 + $0x1], 0  ;;  %s2492_s29 = smov 0   ;;  %s2494_s30 = smov 0  }
   0xa   :  { %s2496_s15 = smov 0   ;;  %s2498_s16 = smov 0  }
   0xb   :  { %s2500_s17 = smov 0   ;;  %s2502_s18 = smov 0  }
   0xc LB: > { %2931 = sst [smem:[#allocation11_spill]] %s2384_s29  ;;  %s1956_s19 = sadd.s32 4294967295, %s2404_s18   ;;  %s2404_s18 = sphi %s2502_s18, %s33_s18   ;;  %s2400_s17 = sphi %s2500_s17, %s2963_s17   ;;  %s2396_s16 = sphi %s2498_s16, %s2959_s16   ;;  %s2392_s15 = sphi %s2496_s15, %s2958_s15   ;;  %s2388_s30 = sphi %s2494_s30, %s2962_s30   ;;  %s2384_s29 = sphi %s2492_s29, %s2961_s29  }
   0xd   : > { %2932 = sst [smem:[#allocation12_spill]] %s2392_s15  ;;  %s1957_s20 = sadd.s32 4294967294, %s2404_s18  }
   0xe   : > { %2933 = sst [smem:[#allocation13_spill]] %s2400_s17  ;;  %s45_s21 = sadd.s32 1, %s2400_s17 }
   0xf   : > { %s52_s22 = sadd.s32 1, %s2392_s15  ;;  %p47_p0 = scmp.ge.s32.totalorder %s45_s21, 2 }
  0x10   : > { %p59_p1 = scmp.ne.s32.totalorder %s2392_s15, %s2388_s30  ;;  %p60_p2 = scmp.eq.s32.totalorder %s2404_s18, 0 }
  0x11   : > { %p65_p3 = scmp.ne.s32.totalorder %s2388_s30, %s2384_s29  ;;  %s2965_s21 = smov (%p47_p0, %s45_s21), 0 }
  0x12   : > { %2934 = sst [smem:[#allocation14_spill]] %s2965_s21  ;;  %p2533_p4 = por %p60_p2, %p59_p1 }
  0x13   : > { %p66_p5 = scmp.eq.s32.totalorder %s1956_s19, 0  ;;  %s49_s24 = ssub.s32 %s2400_s17, %s2965_s21 }
  0x14   : > { %p371_p6 = scmp.eq.s32.totalorder %s1956_s19, 1  ;;  %p50_p7 = scmp.eq.s32.totalorder %s49_s24, 0 }
  0x15   : > { %p2539_p8 = por %p66_p5, %p65_p3  ;;  %p377_p10 = scmp.eq.s32.totalorder %s1957_s20, 1 }
  0x16   : > { %p2543_p9 = por %p371_p6, %p59_p1  ;;  %p2184_p13 = scmp.lt.s32.totalorder %s2404_s18, 2 }
  0x17   : > { %s2936_s25 = scalar_select %p2539_p8, 1, 0 }
  0x18   : > { %s2937_s26 = scalar_select %p2543_p9, 1, 0 }
  0x19   : > { %s2548_s27 = scalar_select %p50_p7, %s2392_s15, %s52_s22  }
  0x1a   : > { %p2550_p11 = por %p377_p10, %p65_p3  ;;  %s2557_s19 = sand.u32 1, %s2392_s15  }
  0x1b   : > { %2938 = sst [smem:[#allocation15_spill]] %s2548_s27  ;;  %s1960_s24 = sshll.u32 %s2557_s19, 3 }
  0x1c   : > { %s2939_s28 = scalar_select %p2550_p11, 1, 0 }
  0x1d   : > { %s1961_s21 = sshll.u32 %s2400_s17, 7  ;;  %s2941_s0 = sld [smem:[#allocation17_spill]] }
  0x1e   : > { %2940 = sst [smem:[#allocation16_spill]] %s2939_s28  ;;  %s437_s20 = scalar_lea.vmem [#allocation2], %s1960_s24 }
  0x1f   : > { %s444_s22 = sshll.u32 %s437_s20, 4  ;;  %p2570_p0 = pnand %p2184_p13, %p2533_p4  ;;  %s2566_s22 = int_to_ptr.vmem [resolvable:$true] %s444_s22 }
  0x20   : > { %s434_s14 = scalar_lea.sflag [#allocation3], %s2557_s19 }
  0x21   : > { %p2260_p5 = pneg %p2570_p0 }
  0x23   : > { %s2564_s9 = scalar_lea.hbm %s2941_s0, %s1961_s21  ;;  %s2263_s23 = scalar_lea.hbm %s2941_s0, 256 }
  0x24   : > { %s2258_s29 = scalar_lea.hbm %s2564_s9, 128  ;;  %p2264_p4 = scmp.lt.u32.totalorder %s2564_s9, %s2941_s0 }
  0x25   : > { %p2259_p3 = scmp.ne.s32.totalorder %s2564_s9, %s2258_s29  ;;  %p2265_p10 = scmp.lt.u32.totalorder %s2263_s23, %s2258_s29 }
  0x26   : > { %p2267_p12 = scmp.lt.u32.totalorder %s2258_s29, %s2564_s9 }
  0x27   : > { %p2261_p6 = pnand %p2260_p5, %p2259_p3  ;;  %p2266_p13 = por %p2265_p10, %p2264_p4 }
  0x29   : > { %p2262_p7 = pneg %p2261_p6  ;;  %p2268_p1 = por %p2267_p12, %p2266_p13 }
  0x2b   : > { %p2269_p2 = pnand %p2268_p1, %p2262_p7 }
  0x2d   : > { %2272 = shalt.err (!%p2269_p2)
}
  0x2e   : > { %s2273_s28 = scalar_lea.vmem %s2566_s22, 128  ;;  %s2406_s21 = smov [#allocation2]  }
  0x2f   : > { %p2274_p3 = scmp.ne.s32.totalorder %s2566_s22, %s2273_s28  ;;  %s2278_s24 = sshll.u32 %s2406_s21, 4  ;;  %s2279_s24 = int_to_ptr.vmem [resolvable:$false] %s2278_s24 }
  0x30   : > { %s2280_s15 = scalar_lea.vmem %s2279_s24, 256  ;;  %p2281_p9 = scmp.lt.s32.totalorder %s2566_s22, %s2279_s24 }
  0x31   : > { %p2276_p6 = pnand %p2274_p3, %p2260_p5  ;;  %p2282_p4 = scmp.lt.s32.totalorder %s2280_s15, %s2273_s28 }
  0x33   : > { %p2277_p11 = pneg %p2276_p6  ;;  %p2283_p10 = por %p2282_p4, %p2281_p9 }
  0x35   : > { %p2284_p12 = pnand %p2283_p10, %p2277_p11 }
  0x37   : > { %2287 = shalt.err (!%p2284_p12)
}
  0x38   : > { %2176 = dma.hbm_to_vmem [thread:$0]  (!%p2570_p0), %s2564_s9, 128, %s2566_s22, %s434_s14  }
  0x39   : > { %p2943_p1 = scmp.lt.s32.totalorder %s2404_s18, 3  ;;  %p2944_p2 = scmp.ge.s32.totalorder %s2404_s18, 1 }
  0x3a   : > { %s1962_s28 = sshll.u32 %s2557_s19, 1  ;;  %s1963_s23 = sshll.u32 %s2400_s17, 5 }
  0x3b   : > { %p2606_p7 = pnand %p2944_p2, %p2943_p1  ;;  %s2615_s24 = scalar_lea.hbm %s2906_s1, %s1963_s23 }
  0x3c   : > { %s455_s15 = scalar_lea.vmem [#allocation5], %s1962_s28  ;;  %s452_s9 = scalar_lea.sflag [#allocation6], %s2557_s19 }
  0x3d   : > { %s2945_s29 = scalar_select %p2606_p7, 1, 0 }
  0x3e   : > { %s463_s0 = sshll.u32 %s455_s15, 4  ;;  %s2288_s22 = scalar_lea.hbm %s2615_s24, 32  ;;  %s464_s0 = int_to_ptr.vmem [resolvable:$true] %s463_s0 }
  0x3f   : > { %p2289_p9 = scmp.ne.s32.totalorder %s2615_s24, %s2288_s22  ;;  %s2293_s20 = scalar_lea.hbm %s2906_s1, 64 }
  0x40   : > { %p2294_p3 = scmp.lt.u32.totalorder %s2615_s24, %s2906_s1  ;;  %p2295_p6 = scmp.lt.u32.totalorder %s2293_s20, %s2288_s22 }
  0x41   : > { %p2291_p11 = pnand %p2289_p9, %p2260_p5  ;;  %p2297_p10 = scmp.lt.u32.totalorder %s2288_s22, %s2615_s24 }
  0x42   : > { %p2296_p4 = por %p2295_p6, %p2294_p3 }
  0x43   : > { %p2292_p13 = pneg %p2291_p11 }
  0x44   : > { %p2298_p12 = por %p2297_p10, %p2296_p4 }
  0x46   : > { %p2299_p1 = pnand %p2298_p12, %p2292_p13 }
  0x48   : > { %2302 = shalt.err (!%p2299_p1)
}
  0x49   : > { %s2303_s19 = scalar_lea.vmem %s464_s0, 32  ;;  %s2407_s28 = smov [#allocation5]  }
  0x4a   : > { %p2304_p2 = scmp.ne.s32.totalorder %s464_s0, %s2303_s19  ;;  %s2308_s17 = sshll.u32 %s2407_s28, 4  ;;  %s2309_s17 = int_to_ptr.vmem [resolvable:$false] %s2308_s17 }
  0x4b   : > { %s2310_s15 = scalar_lea.vmem %s2309_s17, 64  ;;  %p2311_p8 = scmp.lt.s32.totalorder %s464_s0, %s2309_s17 }
  0x4c   : > { %p2306_p9 = pnand %p2304_p2, %p2260_p5  ;;  %p2312_p7 = scmp.lt.s32.totalorder %s2310_s15, %s2303_s19 }
  0x4e   : > { %p2307_p11 = pneg %p2306_p9  ;;  %p2313_p3 = por %p2312_p7, %p2311_p8 }
  0x50   : > { %p2314_p6 = pnand %p2313_p3, %p2307_p11 }
  0x52   : > { %2317 = shalt.err (!%p2314_p6)
}
  0x53   : > { %2179 = dma.hbm_to_vmem [thread:$0]  (!%p2570_p0), %s2615_s24, 32, %s464_s0, %s452_s9  }
  0x54   : > { %p2946_p13 = scmp.ne.s32.totalorder %s2945_s29, 0 }
  0x55   : > { %s2640_s22 = sand.u32 (!%p2946_p13), 1, %s2388_s30   ;;  %p2947_p8 = scmp.ne.s32.totalorder (!%p2946_p13), %s2936_s25, 0 }
  0x56   : > { %472 = sbr.rel (%p2946_p13) target bundleno = 2341 (0x925), region = 76  ;;  %s1965_s14 = sshll.u32 (!%p2946_p13), %s2640_s22, 3 }
  0x57   : > { %s475_s20 = scalar_lea.sflag (!%p2946_p13), [#allocation3], %s2640_s22  ;;  %s478_s23 = scalar_lea.vmem (!%p2946_p13), [#allocation2], %s1965_s14 }
  0x5d   : > { %2371 = dma.done.wait (%p2947_p8), %s475_s20, 128  }
  0x5e   : > { %2373 = vsyncadd (%p2947_p8), %s475_s20, 4294967168  ;;  %s1966_s0 = sshll.u32 %s2640_s22, 1  ;;  %s484_s27 = scalar_lea.sflag [#allocation6], %s2640_s22 }
  0x5f   : > { %s2652_s29 = scalar_lea.vmem [#allocation5], %s1966_s0 }
  0x60   : > { %2375 = dma.done.wait (%p2947_p8), %s484_s27, 32  }
  0x61   : > { %2377 = vsyncadd (%p2947_p8), %s484_s27, 4294967264  ;;  %vm540_vm0 = vcmask 261120   ;;  %v2658_v0 = vld [vmem:[%s478_s23] sm:$0xff]  ;;  %v571_v9 = vld [vmem:[%s2907_s2 + $0x10] sm:$0xff]  ;;  %v2408_v10 = vmov 0.0|0.0   ;;  %vm2409_vm1 = vmmov 0  }
  0x62   : > { %v541_v1 = vsel %vm540_vm0, %v2658_v0, 0.0  ;;  %v569_v7 = vld [vmem:[%s2907_s2] sm:$0xff]  ;;  %v570_v8 = vld [vmem:[%s2907_s2 + $0x8] sm:$0xff]  ;;  %2143 = vmatprep.subr.bf16.mxu0 %v2408_v10  ;;  %v572_v12 = vld [vmem:[%s2907_s2 + $0x18] sm:$0xff]  ;;  %v2410_v13 = vmov 0.0   ;;  %s2411_s25 = smov 104  }
  0x63   : > { %542 = vadd.xlane.f32.xlu0 %v541_v1  ;;  %v2144_v11 = vpack.c.bf16 %v570_v8, %v569_v7  ;;  %2050 = vmatprep.mubr.msk.f32.mxu0 %vm2409_vm1, %v2410_v13  ;;  %v2147_v14 = vpack.c.bf16 %v572_v12, %v571_v9  ;;  %v1968_v19 = vld [vmem:[%s2915_s10] ss:$0 sm:$0xff]  ;;  %s2412_s21 = smov 120   ;;  %s2413_s19 = smov 112   ;;  %vm662_vm2 = vcmask 64512   ;;  %vm1762_vm4 = vcmask 523264  }
  0x64   : > { %2058 = vmatprep.subr.mxu1 %v2410_v13  ;;  %2060 = vmatprep.mubr.msk.f32.mxu1 %vm2409_vm1, %v2410_v13  ;;  %v1969_v21 = vld [vmem:[%s2916_s11] ss:$0 sm:$0xff]  ;;  %s2414_s28 = smov 96   ;;  %s2415_s17 = smov 64   ;;  %v969_v39 = vld [vmem:[%s2652_s29] sm:$0x3] }
  0x65   : > { %2145 = vmatpush3.bf16.msra.mxu0 %v2144_v11  ;;  %v1970_v24 = vld [vmem:[%s2908_s3] ss:$0 sm:$0xff]  ;;  %v970_v40 = vunpack.c.0.s8 %v969_v39  ;;  %s2950_s23 = sld [smem:[#allocation18_spill]]  ;;  %s1996_s0 = sshll.u32 %s2396_s16, 7 }
  0x66   : > { %2146 = vmatprep.subr.bf16.mxu0 %v2408_v10  ;;  %s536_s27 = scalar_lea.vmem [#allocation7], %s1965_s14  ;;  %s1839_s16 = scalar_lea.sflag [#allocation4], %s2640_s22 }
  0x67   : > { %vm2719_vm3 = vcmp.eq.s32.totalorder %v970_v40, 0  ;;  %s1853_s24 = sshll.u32 %s536_s27, 4  ;;  %p2952_p5 = scmp.ne.s32.totalorder %s2937_s26, 0  ;;  %s2857_s24 = int_to_ptr.vmem [resolvable:$true] %s1853_s24 }
  0x68   : > { %s2416_s14 = smov [#allocation7]  }
  0x69   : > { %2148 = vmatpush3.bf16.msra.mxu0 %v2147_v14 }
  0x6a   : > { %2053 = vmatprep.subr.mxu0 %v2410_v13 }
  0xf0   : > { %v543_v2 = vpop.xlane.xlu0 %542 }
  0xf1   : > { %v545_v3 = vmul.f32 0.03125, %v543_v2 }
  0xf3   : > { %v546_v4 = vsub.f32 %v2658_v0, %v545_v3 }
  0xf5   : > { %v547_v5 = vmul.f32 %v546_v4, %v546_v4 }
  0xf7   : > { %v548_v6 = vsel %vm540_vm0, %v547_v5, 0.0 }
  0xf8   : > { %549 = vadd.xlane.f32.xlu0 %v548_v6 }
 0x185   : > { %v550_v15 = vpop.xlane.xlu0 %549 }
 0x186   : > { %v551_v16 = vmul.f32 0.03125, %v550_v15 }
 0x188   : > { %v552_v17 = vadd.f32 1e-05, %v551_v16 }
 0x18a   : > { %2242 = vrsqrt.f32 %v552_v17 }
 0x194   : > { %v2243_v18 = vpop.eup %2242 }
 0x195   : > { %v554_v20 = vmul.f32 %v2243_v18, %v546_v4 }
 0x197   : > { %v561_v22 = vmul.f32 %v1968_v19, %v554_v20 }
 0x199   : > { %v568_v23 = vadd.f32 %v1969_v21, %v561_v22 }
 0x19b   : > { %2051 = vmatmul.mubr.msk.f32.vlgmr.msra.gmra.mrb[0].mxu0 %vm540_vm0, %v568_v23 }
 0x19c   : > { %2055 = vmatprep.mubr.msk.f32.mxu0 %vm2409_vm1, %v2410_v13 }
 0x26e   : > { %v649_v25 = vpop.f32.mrb[0].mxu0 }
 0x26f   : > { %v650_v26 = vadd.f32 %v1970_v24, %v649_v25  ;;  %v2052_v27 = vpop.f32.mrb[1].mxu0 }
 0x271   : > { %658 = vrot.lane.b32.xlu0 %v650_v26, %s2411_s25  ;;  %654 = vrot.lane.b32.xlu1 %v650_v26, %s2412_s21  ;;  %s2951_s21 = sld [smem:[#allocation19_spill]] }
 0x275   : > { %656 = vrot.lane.b32.xlu1 %v650_v26, %s2413_s19 }
 0x277   : > { %s2855_s19 = scalar_lea.hbm %s2951_s21, %s1996_s0 }
 0x279   : > { %660 = vrot.lane.b32.xlu1 %v650_v26, %s2414_s28 }
 0x2e3   : > { %v655_v28 = vpop.permute.xlu1 %654  ;;  %v659_v30 = vpop.permute.xlu0 %658 }
 0x2e4   : > { %737 = vrot.lane.b32.xlu1 %v655_v28, %s2414_s28 }
 0x2e7   : > { %v657_v29 = vpop.permute.xlu1 %656 }
 0x2e8   : > { %1161 = vrot.lane.b32.xlu0 %v657_v29, %s2415_s17  ;;  %813 = vrot.lane.b32.xlu1 %v657_v29, %s2414_s28 }
 0x2eb   : > { %v661_v31 = vpop.permute.xlu1 %660 }
 0x2ec   : > { %889 = vrot.lane.b32.xlu1 %v659_v30, %s2414_s28  ;;  %2054 = vmatpush3.xpose.msk.msra.mxu0 %vm662_vm2, %v661_v31  ;;  %s2318_s28 = scalar_lea.vmem %s2857_s24, 128 }
 0x2ed   : > { %2063 = vmatprep.subr.mxu0 %v2410_v13  ;;  %p2319_p0 = scmp.ne.s32.totalorder %s2857_s24, %s2318_s28 }
 0x2ef   : > { %2056 = vmatmul.mubr.msk.f32.vlgmr.msra.gmra.mrb[2].mxu0 %vm662_vm2, %v650_v26  ;;  %p2320_p7 = pnand %p2319_p0, %p2952_p5 }
 0x2f0   : > { %1009 = vrot.lane.b32.xlu1 %v650_v26, %s2415_s17  ;;  %2065 = vmatprep.mubr.msk.f32.mxu0 %vm2409_vm1, %v2410_v13 }
 0x2f1   : > { %p2321_p4 = pneg %p2320_p7 }
 0x2f4   : > { %1085 = vrot.lane.b32.xlu1 %v655_v28, %s2415_s17 }
 0x2f8   : > { %1237 = vrot.lane.b32.xlu1 %v659_v30, %s2415_s17  ;;  %s2322_s17 = sshll.u32 %s2416_s14, 4  ;;  %s2323_s17 = int_to_ptr.vmem [resolvable:$false] %s2322_s17 }
 0x2f9   : > { %s2324_s29 = scalar_lea.vmem %s2323_s17, 256  ;;  %p2325_p10 = scmp.lt.s32.totalorder %s2857_s24, %s2323_s17 }
 0x2fa   : > { %p2326_p12 = scmp.lt.s32.totalorder %s2324_s29, %s2318_s28 }
 0x2fc   : > { %p2327_p1 = por %p2326_p12, %p2325_p10 }
 0x2fe   : > { %p2328_p2 = pnand %p2327_p1, %p2321_p4 }
 0x356   : > { %v738_v32 = vpop.permute.xlu1 %737 }
 0x357   : > { %2059 = vmatpush3.xpose.msk.msra.mxu1 %vm662_vm2, %v738_v32 }
 0x358   : > { %2068 = vmatprep.subr.mxu1 %v2410_v13 }
 0x35a   : > { %2061 = vmatmul.mubr.msk.f32.vlgmr.msra.gmra.mrb[0].mxu1 %vm662_vm2, %v655_v28  ;;  %v814_v33 = vpop.permute.xlu1 %813  ;;  %v1162_v26 = vpop.permute.xlu0 %1161  ;;  %v1313_v28 = vld [vmem:[%s2909_s4] sm:$0xff] }
 0x35b   : > { %2064 = vmatpush3.xpose.msk.msra.mxu0 %vm662_vm2, %v814_v33  ;;  %2070 = vmatprep.mubr.msk.f32.mxu1 %vm2409_vm1, %v2410_v13  ;;  %v1316_v33 = vld [vmem:[%s2909_s4 + $0x18] sm:$0xff] }
 0x35c   : > { %2073 = vmatprep.subr.mxu0 %v2410_v13 }
 0x35e   : > { %2066 = vmatmul.mubr.msk.f32.vlgmr.msra.gmra.mrb[4].mxu0 %vm662_vm2, %v657_v29  ;;  %v890_v34 = vpop.permute.xlu1 %889  ;;  %v1314_v29 = vld [vmem:[%s2909_s4 + $0x8] sm:$0xff] }
 0x35f   : > { %2069 = vmatpush3.xpose.msk.msra.mxu1 %vm662_vm2, %v890_v34  ;;  %2075 = vmatprep.mubr.msk.f32.mxu0 %vm2409_vm1, %v2410_v13 }
 0x360   : > { %2078 = vmatprep.subr.mxu1 %v2410_v13 }
 0x362   : > { %2071 = vmatmul.mubr.msk.f32.vlgmr.msra.gmra.mrb[2].mxu1 %vm662_vm2, %v659_v30  ;;  %v1010_v35 = vpop.permute.xlu1 %1009  ;;  %v1315_v30 = vld [vmem:[%s2909_s4 + $0x10] sm:$0xff] }
 0x363   : > { %2074 = vmatpush3.msra.mxu0 %v1010_v35  ;;  %2080 = vmatprep.mubr.msk.f32.mxu1 %vm2409_vm1, %v2410_v13 }
 0x364   : > { %2083 = vmatprep.subr.mxu0 %v2410_v13 }
 0x366   : > { %v1086_v36 = vpop.permute.xlu1 %1085 }
 0x367   : > { %2079 = vmatpush3.msra.mxu1 %v1086_v36 }
 0x368   : > { %2088 = vmatprep.subr.mxu1 %v2410_v13 }
 0x36a   : > { %v1238_v27 = vpop.permute.xlu1 %1237 }
 0x3c2   : > { %v733_v37 = vpop.f32.mrb[2].mxu0 }
 0x3c3   : > { %v2057_v38 = vpop.f32.mrb[3].mxu0  ;;  %v965_v41 = vmul.f32 0.35355338, %v733_v37 }
 0x3c5   : > { %v974_v44 = vsel %vm2719_vm3, -1e+09, %v965_v41 }
 0x3c6   : > { %v978_v48 = vsel %vm662_vm2, %v974_v44, -inf }
 0x42d   : > { %v809_v43 = vpop.f32.mrb[0].mxu1 }
 0x42e   : > { %v966_v45 = vmul.f32 0.35355338, %v809_v43  ;;  %v2062_v46 = vpop.f32.mrb[1].mxu1 }
 0x430   : > { %v975_v47 = vsel %vm2719_vm3, -1e+09, %v966_v45 }
 0x431   : > { %v979_v49 = vsel %vm662_vm2, %v975_v47, -inf  ;;  %v885_v50 = vpop.f32.mrb[4].mxu0 }
 0x432   : > { %v982_v51 = vmax.f32 %v978_v48, %v979_v49  ;;  %v967_v52 = vmul.f32 0.35355338, %v885_v50  ;;  %v2067_v53 = vpop.f32.mrb[5].mxu0 }
 0x434   : > { %v976_v55 = vsel %vm2719_vm3, -1e+09, %v967_v52 }
 0x435   : > { %v961_v54 = vpop.f32.mrb[2].mxu1  ;;  %v980_v59 = vsel %vm662_vm2, %v976_v55, -inf }
 0x436   : > { %v968_v56 = vmul.f32 0.35355338, %v961_v54  ;;  %v2072_v57 = vpop.f32.mrb[3].mxu1 }
 0x438   : > { %v977_v58 = vsel %vm2719_vm3, -1e+09, %v968_v56 }
 0x439   : > { %v981_v60 = vsel %vm662_vm2, %v977_v58, -inf }
 0x43a   : > { %v983_v61 = vmax.f32 %v980_v59, %v981_v60 }
 0x43c   : > { %v984_v62 = vmax.f32 %v982_v51, %v983_v61 }
 0x43e   : > { %v985_v63 = vsub.f32 %v974_v44, %v984_v62  ;;  %v986_v1 = vsub.f32 %v975_v47, %v984_v62  ;;  %v987_v2 = vsub.f32 %v976_v55, %v984_v62  ;;  %v988_v3 = vsub.f32 %v977_v58, %v984_v62 }
 0x440   : > { %v989_v4 = vmul.f32 1.442695, %v985_v63  ;;  %v991_v5 = vmul.f32 1.442695, %v986_v1  ;;  %v993_v6 = vmul.f32 1.442695, %v987_v2 }
 0x441   : > { %v995_v7 = vmul.f32 1.442695, %v988_v3  ;;  %v1654_v63 = vld [vmem:[%s2911_s6] sm:$0xff]  ;;  %v1656_v2 = vld [vmem:[%s2911_s6 + $0x10] sm:$0xff]  ;;  %v1657_v3 = vld [vmem:[%s2911_s6 + $0x18] sm:$0xff] }
 0x442   : > { %2244 = vpow2.f32 %v989_v4  ;;  %v2153_v4 = vpack.c.bf16 %v1657_v3, %v1656_v2 }
 0x443   : > { %2246 = vpow2.f32 %v991_v5 }
 0x444   : > { %2248 = vpow2.f32 %v993_v6 }
 0x445   : > { %2250 = vpow2.f32 %v995_v7 }
 0x44c   : > { %v2245_v8 = vpop.eup %2244 }
 0x44d   : > { %v2247_v9 = vpop.eup %2246  ;;  %v997_v11 = vsel %vm662_vm2, %v2245_v8, 0.0 }
 0x44e   : > { %v2249_v12 = vpop.eup %2248  ;;  %v998_v14 = vsel %vm662_vm2, %v2247_v9, 0.0 }
 0x44f   : > { %v2251_v15 = vpop.eup %2250  ;;  %v999_v16 = vadd.f32 %v998_v14, %v997_v11  ;;  %v1000_v17 = vsel %vm662_vm2, %v2249_v12, 0.0 }
 0x450   : > { %v1002_v19 = vsel %vm662_vm2, %v2251_v15, 0.0 }
 0x451   : > { %v1001_v18 = vadd.f32 %v1000_v17, %v999_v16  ;;  %v1747_v16 = vld [vmem:[%s2913_s8] sm:$0xff]  ;;  %v1748_v17 = vld [vmem:[%s2913_s8 + $0x8] sm:$0xff] }
 0x453   : > { %v1003_v20 = vadd.f32 %v1002_v19, %v1001_v18  ;;  %v2156_v18 = vpack.c.bf16 %v1748_v17, %v1747_v16  ;;  %v1749_v19 = vld [vmem:[%s2913_s8 + $0x10] sm:$0xff] }
 0x455   : > { %2252 = vrcp.f32 %v1003_v20  ;;  %v1750_v20 = vld [vmem:[%s2913_s8 + $0x18] sm:$0xff] }
 0x45f   : > { %v2253_v21 = vpop.eup %2252 }
 0x460   : > { %v1005_v22 = vmul.f32 %v2253_v21, %v2245_v8  ;;  %v1006_v23 = vmul.f32 %v2253_v21, %v2247_v9  ;;  %v1007_v24 = vmul.f32 %v2253_v21, %v2249_v12  ;;  %v1008_v25 = vmul.f32 %v2253_v21, %v2251_v15  ;;  %v1989_v9 = vld [vmem:[%s2917_s12] ss:$0 sm:$0xff] }
 0x461   : > { %v1990_v12 = vld [vmem:[%s2918_s13] ss:$0 sm:$0xff]  ;;  %v2159_v21 = vpack.c.bf16 %v1750_v20, %v1749_v19 }
 0x462   : > { %2076 = vmatmul.mubr.msk.f32.vlgmr.msra.gmra.mrb[6].mxu0 %vm662_vm2, %v1005_v22  ;;  %2081 = vmatmul.mubr.msk.f32.vlgmr.msra.gmra.mrb[4].mxu1 %vm662_vm2, %v1006_v23  ;;  %v1751_v22 = vld [vmem:[%s2913_s8 + $0x20] sm:$0xff]  ;;  %v1752_v23 = vld [vmem:[%s2913_s8 + $0x28] sm:$0xff] }
 0x463   : > { %2084 = vmatpush3.msra.mxu0 %v1162_v26  ;;  %2089 = vmatpush3.msra.mxu1 %v1238_v27  ;;  %v1754_v26 = vld [vmem:[%s2913_s8 + $0x38] sm:$0xff] }
 0x464   : > { %2085 = vmatprep.mubr.msk.f32.mxu0 %vm2409_vm1, %v2410_v13  ;;  %2090 = vmatprep.mubr.msk.f32.mxu1 %vm2409_vm1, %v2410_v13 }
 0x465   : > { %2093 = vmatprep.subr.mxu0 %v2410_v13  ;;  %2098 = vmatprep.subr.mxu1 %v2410_v13 }
 0x466   : > { %2086 = vmatmul.mubr.msk.f32.vlgmr.msra.gmra.mrb[8].mxu0 %vm662_vm2, %v1007_v24  ;;  %2091 = vmatmul.mubr.msk.f32.vlgmr.msra.gmra.mrb[6].mxu1 %vm662_vm2, %v1008_v25  ;;  %v2162_v24 = vpack.c.bf16 %v1752_v23, %v1751_v22  ;;  %v1753_v25 = vld [vmem:[%s2913_s8 + $0x30] sm:$0xff] }
 0x467   : > { %2094 = vmatpush3.msra.mxu0 %v1313_v28  ;;  %2095 = vmatprep.mubr.msk.f32.mxu0 %vm2409_vm1, %v2410_v13  ;;  %v2165_v27 = vpack.c.bf16 %v1754_v26, %v1753_v25  ;;  %v1991_v28 = vld [vmem:[%s2912_s7] ss:$0 sm:$0xff] }
 0x468   : > { %2100 = vmatprep.mubr.msk.f32.mxu1 %vm2409_vm1, %v2410_v13  ;;  %2103 = vmatprep.subr.mxu0 %v2410_v13 }
 0x469   : > { %2099 = vmatpush3.msra.mxu1 %v1314_v29 }
 0x46a   : > { %2108 = vmatprep.subr.mxu1 %v2410_v13 }
 0x535   : > { %v1081_v31 = vpop.f32.mrb[6].mxu0  ;;  %v1157_v32 = vpop.f32.mrb[4].mxu1 }
 0x536   : > { %v2077_v34 = vpop.f32.mrb[7].mxu0  ;;  %v2082_v35 = vpop.f32.mrb[5].mxu1  ;;  %2096 = vmatmul.mubr.msk.f32.vlgmr.msra.gmra.mrb[10].mxu0 %vm662_vm2, %v1081_v31  ;;  %2101 = vmatmul.mubr.msk.f32.vlgmr.msra.gmra.mrb[8].mxu1 %vm662_vm2, %v1157_v32 }
 0x537   : > { %2104 = vmatpush3.msra.mxu0 %v1315_v30  ;;  %2105 = vmatprep.mubr.msk.f32.mxu0 %vm2409_vm1, %v2410_v13 }
 0x538   : > { %2109 = vmatpush3.msra.mxu1 %v1316_v33  ;;  %2110 = vmatprep.mubr.msk.f32.mxu1 %vm2409_vm1, %v2410_v13 }
 0x539   : > { %v1233_v36 = vpop.f32.mrb[8].mxu0  ;;  %v1309_v37 = vpop.f32.mrb[6].mxu1  ;;  %2149 = vmatprep.subr.bf16.mxu0 %v2408_v10  ;;  %2155 = vmatprep.subr.bf16.mxu1 %v2408_v10 }
 0x53a   : > { %v2087_v38 = vpop.f32.mrb[9].mxu0  ;;  %v2092_v39 = vpop.f32.mrb[7].mxu1  ;;  %2106 = vmatmul.mubr.msk.f32.vlgmr.msra.gmra.mrb[12].mxu0 %vm662_vm2, %v1233_v36  ;;  %2111 = vmatmul.mubr.msk.f32.vlgmr.msra.gmra.mrb[10].mxu1 %vm662_vm2, %v1309_v37 }
 0x53b   : > { %2121 = vmatprep.mubr.msk.f32.mxu0 %vm2409_vm1, %v2410_v13  ;;  %2140 = vmatprep.mubr.msk.f32.mxu1 %vm2409_vm1, %v2410_v13  ;;  %v1988_v13 = vld [vmem:[%s2910_s5] ss:$0 sm:$0xff] }
 0x53c   : > { %2157 = vmatpush3.bf16.msra.mxu1 %v2156_v18 }
 0x53d   : > { %2158 = vmatprep.subr.bf16.mxu1 %v2408_v10 }
 0x540   : > { %2160 = vmatpush3.bf16.msra.mxu1 %v2159_v21 }
 0x541   : > { %2161 = vmatprep.subr.bf16.mxu1 %v2408_v10 }
 0x544   : > { %2163 = vmatpush3.bf16.msra.mxu1 %v2162_v24 }
 0x545   : > { %2164 = vmatprep.subr.bf16.mxu1 %v2408_v10 }
 0x548   : > { %2166 = vmatpush3.bf16.msra.mxu1 %v2165_v27 }
 0x609   : > { %v1386_v40 = vpop.f32.mrb[10].mxu0  ;;  %v1459_v41 = vpop.f32.mrb[8].mxu1 }
 0x60a   : > { %v1609_v42 = vsel %vm540_vm0, %v1386_v40, 0.0  ;;  %v1610_v43 = vsel %vm540_vm0, %v1459_v41, 0.0  ;;  %v2097_v44 = vpop.f32.mrb[11].mxu0  ;;  %v2102_v45 = vpop.f32.mrb[9].mxu1  ;;  %v1993_v40 = vld [vmem:[%s2950_s23] ss:$0 sm:$0xff] }
 0x60b   : > { %v1611_v46 = vadd.f32 %v1610_v43, %v1609_v42 }
 0x60d   : > { %v1532_v47 = vpop.f32.mrb[12].mxu0  ;;  %v1605_v48 = vpop.f32.mrb[10].mxu1 }
 0x60e   : > { %v1612_v49 = vsel %vm540_vm0, %v1532_v47, 0.0  ;;  %v2107_v50 = vpop.f32.mrb[13].mxu0  ;;  %v2112_v51 = vpop.f32.mrb[11].mxu1  ;;  %v1614_v53 = vsel %vm540_vm0, %v1605_v48, 0.0 }
 0x60f   : > { %v1613_v52 = vadd.f32 %v1612_v49, %v1611_v46 }
 0x611   : > { %v1615_v54 = vadd.f32 %v1614_v53, %v1613_v52 }
 0x613   : > { %v1623_v55 = vadd.f32 %v1988_v13, %v1615_v54 }
 0x615   : > { %v2789_v56 = vadd.f32 %v1623_v55, %v2658_v0  ;;  %v1655_v0 = vld [vmem:[%s2911_s6 + $0x8] sm:$0xff] }
 0x616   : > { %v2150_v1 = vpack.c.bf16 %v1655_v0, %v1654_v63 }
 0x617   : > { %v1627_v57 = vsel %vm540_vm0, %v2789_v56, 0.0 }
 0x618   : > { %1628 = vadd.xlane.f32.xlu0 %v1627_v57  ;;  %2151 = vmatpush3.bf16.msra.mxu0 %v2150_v1 }
 0x619   : > { %2152 = vmatprep.subr.bf16.mxu0 %v2408_v10 }
 0x61c   : > { %2154 = vmatpush3.bf16.msra.mxu0 %v2153_v4 }
 0x6a5   : > { %v1629_v58 = vpop.xlane.xlu0 %1628 }
 0x6a6   : > { %v1630_v59 = vmul.f32 0.03125, %v1629_v58 }
 0x6a8   : > { %v1631_v60 = vsub.f32 %v2789_v56, %v1630_v59 }
 0x6aa   : > { %v1632_v61 = vmul.f32 %v1631_v60, %v1631_v60 }
 0x6ac   : > { %v1633_v62 = vsel %vm540_vm0, %v1632_v61, 0.0 }
 0x6ad   : > { %1634 = vadd.xlane.f32.xlu1 %v1633_v62 }
 0x73a   : > { %v1635_v5 = vpop.xlane.xlu1 %1634 }
 0x73b   : > { %v1636_v6 = vmul.f32 0.03125, %v1635_v5 }
 0x73d   : > { %v1637_v7 = vadd.f32 1e-05, %v1636_v6 }
 0x73f   : > { %2254 = vrsqrt.f32 %v1637_v7 }
 0x749   : > { %v2255_v8 = vpop.eup %2254 }
 0x74a   : > { %v1639_v11 = vmul.f32 %v2255_v8, %v1631_v60 }
 0x74c   : > { %v1646_v14 = vmul.f32 %v1989_v9, %v1639_v11 }
 0x74e   : > { %v1653_v15 = vadd.f32 %v1990_v12, %v1646_v14 }
 0x750   : > { %2122 = vmatmul.mubr.msk.f32.vlgmr.msra.gmra.mrb[14].mxu0 %vm540_vm0, %v1653_v15 }
 0x823   : > { %v1734_v29 = vpop.f32.mrb[14].mxu0 }
 0x824   : > { %v1735_v30 = vadd.f32 %v1991_v28, %v1734_v29  ;;  %v2123_v31 = vpop.f32.mrb[15].mxu0 }
 0x826   : > { %v1739_v32 = vmul.f32 0.044715, %v1735_v30  ;;  %v1738_v38 = vmul.f32 0.5, %v1735_v30 }
 0x828   : > { %v1740_v33 = vmul.f32 %v1739_v32, %v1735_v30 }
 0x82a   : > { %v1741_v34 = vmul.f32 %v1740_v33, %v1735_v30 }
 0x82c   : > { %v1742_v35 = vadd.f32 %v1741_v34, %v1735_v30 }
 0x82e   : > { %v1743_v36 = vmul.f32 0.7978846, %v1742_v35 }
 0x830   : > { %2256 = vtanh.f32 %v1743_v36 }
 0x83a   : > { %v2257_v37 = vpop.eup %2256 }
 0x83b   : > { %v1745_v10 = vadd.f32 1.0, %v2257_v37 }
 0x83d   : > { %v1746_v39 = vmul.f32 %v1745_v10, %v1738_v38 }
 0x83f   : > { %2141 = vmatmul.mubr.msk.f32.vlgmr.msra.gmra.mrb[12].mxu1 %vm1762_vm4, %v1746_v39 }
 0x912   : > { %v1832_v41 = vpop.f32.mrb[12].mxu1 }
 0x913   : > { %v1833_v42 = vadd.f32 %v1993_v40, %v1832_v41  ;;  %v2142_v43 = vpop.f32.mrb[13].mxu1 }
 0x915   : > { %v1836_v44 = vadd.f32 %v1833_v42, %v2789_v56 }
 0x917   : > { %1837 = vst.msk [vmem:[%s536_s27] sm:$0xff] %vm540_vm0, %v1836_v44 }
 0x918   : > { %2331 = shalt.err (!%p2328_p2)
}
 0x919   : > { %s2332_s22 = scalar_lea.hbm %s2855_s19, 128  ;;  %s2336_s23 = scalar_lea.hbm %s2951_s21, 256 }
 0x91a   : > { %p2333_p9 = scmp.ne.s32.totalorder %s2855_s19, %s2332_s22  ;;  %p2337_p6 = scmp.lt.u32.totalorder %s2855_s19, %s2951_s21 }
 0x91b   : > { %p2338_p13 = scmp.lt.u32.totalorder %s2336_s23, %s2332_s22  ;;  %p2340_p0 = scmp.lt.u32.totalorder %s2332_s22, %s2855_s19 }
 0x91c   : > { %p2334_p11 = pnand %p2333_p9, %p2952_p5 }
 0x91d   : > { %p2339_p8 = por %p2338_p13, %p2337_p6 }
 0x91e   : > { %p2335_p3 = pneg %p2334_p11 }
 0x91f   : > { %p2341_p7 = por %p2340_p0, %p2339_p8 }
 0x921   : > { %p2342_p4 = pnand %p2341_p7, %p2335_p3 }
 0x923   : > { %2345 = shalt.err (!%p2342_p4)
}
 0x924   : > { %2171 = dma.vmem_to_hbm [thread:$0]  (%p2952_p5), %s2857_s24, 128, %s2855_s19, %s1839_s16  }
 0x925 PF: > { %s2953_s9 = sld [smem:[#allocation11_spill]]  ;;  %s2954_s25 = sld [smem:[#allocation16_spill]] }
 0x926   : > { %p2956_p12 = scmp.ge.s32.totalorder %s2404_s18, 2 }
 0x92b   : > { %s1865_s28 = sand.u32 1, %s2953_s9   ;;  %p2955_p10 = scmp.ne.s32.totalorder %s2954_s25, 0 }
 0x92c   : > { %s1866_s14 = scalar_lea.sflag [#allocation4], %s1865_s28 }
 0x92d   : > { %p2181_p1 = pnand %p2956_p12, %p2955_p10 }
 0x92f   : > { %2379 = dma.done.wait (!%p2181_p1), %s1866_s14, 128  }
 0x930   : > { %2381 = vsyncadd (!%p2181_p1), %s1866_s14, 4294967168  ;;  %s33_s18 = sadd.s32 1, %s2404_s18   ;;  %s2957_s17 = sld [smem:[#allocation12_spill]] }
 0x931   : > { %p30_p2 = scmp.ge.s32.totalorder %s33_s18, 4   ;;  %s2958_s15 = sld [smem:[#allocation15_spill]] }
 0x932   : > { %s2959_s16 = sld [smem:[#allocation13_spill]]  ;;  %s2960_s26 = sld [smem:[#allocation14_spill]] }
 0x933   : > { %s2961_s29 = smov %s2388_s30  ;;  %32 = sbr.rel (!%p30_p2) target bundleno = 12 (0xc), region = 134 }
 0x936   : > { %s2962_s30 = smov %s2957_s17 }
 0x938   : > { %s2963_s17 = smov %s2960_s26 }
 0x93a   :  { %1871 = vsyncpa [#allocation3], 1 }
 0x93b   :  { %1873 = vsyncpa [#allocation3 + $0x1], 1 }
 0x93c   :  { %1874 = vsyncpa [#allocation6], 1 }
 0x93d   :  { %1876 = vsyncpa [#allocation6 + $0x1], 1 }
 0x93e   :  { %1877 = vsyncpa [#allocation4], 1 }
 0x93f   :  { %1879 = vsyncpa [#allocation4 + $0x1], 1 }

</bundles_post_ra>
